<compile_context>
chip_gen: v5e
topology: v5e:2x2
jax: 0.10.0
libtpu: 0.0.40
codegen_flags: <defaults>
</compile_context>

<pallas_src>
import jax
import jax.numpy as jnp
from jax.experimental import pallas as pl
from jax.experimental.pallas import tpu as pltpu


def _round_up(n, m):
    return ((n + m - 1) // m) * m


def _encoder_kernel(x_ref, y_ref, w1x_ref, w1y_ref, b1_ref,
                    w2_ref, b2_ref, w3_ref, b3_ref, out_ref):
    """One batch tile of the 3-layer MLP: 4 matmuls + 2 sigmoids, all in VMEM."""
    # Layer 1: fused concat — x @ W1[:x_dim] + y @ W1[x_dim:] + b1
    h1 = jnp.dot(x_ref[...], w1x_ref[...], preferred_element_type=jnp.float32)
    h1 = h1 + jnp.dot(y_ref[...], w1y_ref[...], preferred_element_type=jnp.float32)
    h1 = jax.nn.sigmoid(h1 + b1_ref[...])                      # bias (1, h) broadcasts

    # Layer 2
    h2 = jnp.dot(h1, w2_ref[...], preferred_element_type=jnp.float32)
    h2 = jax.nn.sigmoid(h2 + b2_ref[...])

    # Layer 3 (output lanes zero-padded to a multiple of 128 -> unmasked stores)
    r = jnp.dot(h2, w3_ref[...], preferred_element_type=jnp.float32)
    out_ref[...] = (r + b3_ref[...]).astype(out_ref.dtype)


def encoder_forward(x, y, params, *, block_batch=512):
    """x: (B, x_dim), y: (B, y_dim) -> r: (B, r_dim)."""
    w1, b1, w2, b2, w3, b3 = params
    batch, x_dim = x.shape
    y_dim = y.shape[1]
    h_dim = w1.shape[1]
    r_dim = w3.shape[1]

    # ---- Split W1 so the concat happens implicitly inside the kernel. ----
    w1x = w1[:x_dim, :]
    w1y = w1[x_dim:, :]

    # ---- Lane-dense output: pad r to a multiple of 128 lanes. ----
    r_pad = _round_up(max(r_dim, 128), 128)
    if r_pad != r_dim:
        w3p = jnp.pad(w3, ((0, 0), (0, r_pad - r_dim)))
        b3p = jnp.pad(b3, ((0, 0), (0, r_pad - r_dim)))
    else:
        w3p, b3p = w3, b3

    # ---- Batch tiling (sublane-aligned, VMEM-budgeted for v5e/v7x). ----
    tb = min(block_batch, _round_up(batch, 8))       # multiple of 8 (f32 sublane)
    padded_batch = _round_up(batch, tb)
    if padded_batch != batch:
        x = jnp.pad(x, ((0, padded_batch - batch), (0, 0)))
        y = jnp.pad(y, ((0, padded_batch - batch), (0, 0)))
    grid = (padded_batch // tb,)

    # Activation tiles move with the grid; weights/biases are grid-invariant
    # (constant index_map -> fetched once, VMEM-resident across steps).
    tile = lambda cols: pl.BlockSpec((tb, cols), lambda i: (i, 0))
    const = lambda a: pl.BlockSpec(a.shape, lambda i: (0,) * a.ndim)

    out = pl.pallas_call(
        _encoder_kernel,
        out_shape=jax.ShapeDtypeStruct((padded_batch, r_pad), jnp.float32),
        grid=grid,
        in_specs=[
            tile(x_dim),        # x
            tile(y_dim),        # y
            const(w1x), const(w1y), const(b1),
            const(w2), const(b2),
            const(w3p), const(b3p),
        ],
        out_specs=tile(r_pad),
        compiler_params=pltpu.CompilerParams(
            dimension_semantics=("parallel",),       # batch rows independent (v7x megacore)
        ),
    )(x, y, w1x, w1y, b1, w2, b2, w3p, b3p)

    # Strip batch + lane padding.
    return out[:batch, :r_dim]


def init_encoder_params(key, x_dim, y_dim, h_dim, r_dim):
    """Deterministic synthetic parameters (PyTorch nn.Linear init, stored transposed)."""
    in_dim = x_dim + y_dim
    ks = jax.random.split(key, 6)

    def linear(kw, kb, fan_in, fan_out):
        bound = 1.0 / jnp.sqrt(fan_in)
        w = jax.random.uniform(kw, (fan_in, fan_out), jnp.float32, -bound, bound)
        b = jax.random.uniform(kb, (1, fan_out), jnp.float32, -bound, bound)
        return w, b

    w1, b1 = linear(ks[0], ks[1], in_dim, h_dim)
    w2, b2 = linear(ks[2], ks[3], h_dim, h_dim)
    w3, b3 = linear(ks[4], ks[5], h_dim, r_dim)
    return (w1, b1, w2, b2, w3, b3)


def encoder_reference(x, y, params):
    """Pure-JAX reference matching the PyTorch forward."""
    w1, b1, w2, b2, w3, b3 = params
    h = jnp.concatenate([x, y], axis=1)
    h = jax.nn.sigmoid(h @ w1 + b1)
    h = jax.nn.sigmoid(h @ w2 + b2)
    return h @ w3 + b3


if __name__ == "__main__":
    # Small shapes consistent with the module: batch=8, x_dim=2, y_dim=2, h_dim=32, r_dim=16
    batch, x_dim, y_dim, h_dim, r_dim = 8, 2, 2, 32, 16

    key = jax.random.PRNGKey(0)
    kx, ky, kp = jax.random.split(key, 3)
    x = jax.random.normal(kx, (batch, x_dim), jnp.float32)
    y = jax.random.normal(ky, (batch, y_dim), jnp.float32)
    params = init_encoder_params(kp, x_dim, y_dim, h_dim, r_dim)

    out = encoder_forward(x, y, params)
    out = jax.block_until_ready(out)

    ref = encoder_reference(x, y, params)
    assert out.shape == (batch, r_dim)
    assert jnp.allclose(out, ref, atol=1e-5, rtol=1e-5), "Pallas kernel mismatch vs reference"

    # Also exercise a batch that is not a tile multiple (padding path).
    batch2 = 37
    x2 = jax.random.normal(jax.random.PRNGKey(1), (batch2, x_dim), jnp.float32)
    y2 = jax.random.normal(jax.random.PRNGKey(2), (batch2, y_dim), jnp.float32)
    out2 = jax.block_until_ready(encoder_forward(x2, y2, params))
    ref2 = encoder_reference(x2, y2, params)
    assert out2.shape == (batch2, r_dim)
    assert jnp.allclose(out2, ref2, atol=1e-5, rtol=1e-5), "Pallas kernel mismatch (padded batch)"

    print("KERNEL_OK")
</pallas_src>

<mosaic_0001>
module attributes {stable_mosaic.version = 11 : i64} {
  func.func @_encoder_kernel(%arg0: i32, %arg1: memref<8x2xf32, #tpu.memory_space<vmem>>, %arg2: memref<8x2xf32, #tpu.memory_space<vmem>>, %arg3: memref<2x32xf32, #tpu.memory_space<vmem>>, %arg4: memref<2x32xf32, #tpu.memory_space<vmem>>, %arg5: memref<1x32xf32, #tpu.memory_space<vmem>>, %arg6: memref<32x32xf32, #tpu.memory_space<vmem>>, %arg7: memref<1x32xf32, #tpu.memory_space<vmem>>, %arg8: memref<32x128xf32, #tpu.memory_space<vmem>>, %arg9: memref<1x128xf32, #tpu.memory_space<vmem>>, %arg10: memref<8x128xf32, #tpu.memory_space<vmem>>) attributes {dimension_semantics = [#tpu.dimension_semantics<parallel>], iteration_bounds = array<i64: 1>, scalar_prefetch = 0 : i64, scratch_operands = 0 : i64, tpu.core_type = #tpu.core_type<tc>, window_params = [{transform_indices = @transform_0, window_bounds = array<i64: 8, 2>}, {transform_indices = @transform_1, window_bounds = array<i64: 8, 2>}, {pipeline_mode = #tpu.pipeline_mode<synchronous>, transform_indices = @transform_2, window_bounds = array<i64: 2, 32>}, {pipeline_mode = #tpu.pipeline_mode<synchronous>, transform_indices = @transform_3, window_bounds = array<i64: 2, 32>}, {pipeline_mode = #tpu.pipeline_mode<synchronous>, transform_indices = @transform_4, window_bounds = array<i64: 1, 32>}, {pipeline_mode = #tpu.pipeline_mode<synchronous>, transform_indices = @transform_5, window_bounds = array<i64: 32, 32>}, {pipeline_mode = #tpu.pipeline_mode<synchronous>, transform_indices = @transform_6, window_bounds = array<i64: 1, 32>}, {pipeline_mode = #tpu.pipeline_mode<synchronous>, transform_indices = @transform_7, window_bounds = array<i64: 32, 128>}, {pipeline_mode = #tpu.pipeline_mode<synchronous>, transform_indices = @transform_8, window_bounds = array<i64: 1, 128>}, {transform_indices = @transform_9, window_bounds = array<i64: 8, 128>}]} {
    %c0 = arith.constant 0 : index
    %c0_0 = arith.constant 0 : index
    %0 = vector.load %arg1[%c0, %c0_0] : memref<8x2xf32, #tpu.memory_space<vmem>>, vector<8x2xf32>
    %c0_1 = arith.constant 0 : index
    %c0_2 = arith.constant 0 : index
    %1 = vector.load %arg3[%c0_1, %c0_2] : memref<2x32xf32, #tpu.memory_space<vmem>>, vector<2x32xf32>
    %cst = arith.constant dense<0.000000e+00> : vector<8x32xf32>
    %2 = tpu.matmul %0, %1, %cst {dimension_numbers = #tpu.dot_dimension_numbers<[1], [0], [0], [1], [0, 0, 1, 1], [], []>} : vector<8x2xf32>, vector<2x32xf32>, vector<8x32xf32> -> vector<8x32xf32>
    %c0_3 = arith.constant 0 : index
    %c0_4 = arith.constant 0 : index
    %3 = vector.load %arg2[%c0_3, %c0_4] : memref<8x2xf32, #tpu.memory_space<vmem>>, vector<8x2xf32>
    %c0_5 = arith.constant 0 : index
    %c0_6 = arith.constant 0 : index
    %4 = vector.load %arg4[%c0_5, %c0_6] : memref<2x32xf32, #tpu.memory_space<vmem>>, vector<2x32xf32>
    %cst_7 = arith.constant dense<0.000000e+00> : vector<8x32xf32>
    %5 = tpu.matmul %3, %4, %cst_7 {dimension_numbers = #tpu.dot_dimension_numbers<[1], [0], [0], [1], [0, 0, 1, 1], [], []>} : vector<8x2xf32>, vector<2x32xf32>, vector<8x32xf32> -> vector<8x32xf32>
    %6 = arith.addf %2, %5 : vector<8x32xf32>
    %c0_8 = arith.constant 0 : index
    %c0_9 = arith.constant 0 : index
    %7 = vector.load %arg5[%c0_8, %c0_9] : memref<1x32xf32, #tpu.memory_space<vmem>>, vector<1x32xf32>
    %8 = vector.broadcast %7 : vector<1x32xf32> to vector<8x32xf32>
    %9 = arith.addf %6, %8 : vector<8x32xf32>
    %10 = arith.negf %9 : vector<8x32xf32>
    %11 = math.exp %10 : vector<8x32xf32>
    %cst_10 = arith.constant 1.000000e+00 : f32
    %12 = vector.broadcast %cst_10 : f32 to vector<8x32xf32>
    %13 = arith.addf %12, %11 : vector<8x32xf32>
    %14 = arith.divf %12, %13 : vector<8x32xf32>
    %c0_11 = arith.constant 0 : index
    %c0_12 = arith.constant 0 : index
    %15 = vector.load %arg6[%c0_11, %c0_12] : memref<32x32xf32, #tpu.memory_space<vmem>>, vector<32x32xf32>
    %cst_13 = arith.constant dense<0.000000e+00> : vector<8x32xf32>
    %16 = tpu.matmul %14, %15, %cst_13 {dimension_numbers = #tpu.dot_dimension_numbers<[1], [0], [0], [1], [0, 0, 1, 1], [], []>} : vector<8x32xf32>, vector<32x32xf32>, vector<8x32xf32> -> vector<8x32xf32>
    %c0_14 = arith.constant 0 : index
    %c0_15 = arith.constant 0 : index
    %17 = vector.load %arg7[%c0_14, %c0_15] : memref<1x32xf32, #tpu.memory_space<vmem>>, vector<1x32xf32>
    %18 = vector.broadcast %17 : vector<1x32xf32> to vector<8x32xf32>
    %19 = arith.addf %16, %18 : vector<8x32xf32>
    %20 = arith.negf %19 : vector<8x32xf32>
    %21 = math.exp %20 : vector<8x32xf32>
    %cst_16 = arith.constant 1.000000e+00 : f32
    %22 = vector.broadcast %cst_16 : f32 to vector<8x32xf32>
    %23 = arith.addf %22, %21 : vector<8x32xf32>
    %24 = arith.divf %22, %23 : vector<8x32xf32>
    %c0_17 = arith.constant 0 : index
    %c0_18 = arith.constant 0 : index
    %25 = vector.load %arg8[%c0_17, %c0_18] : memref<32x128xf32, #tpu.memory_space<vmem>>, vector<32x128xf32>
    %cst_19 = arith.constant dense<0.000000e+00> : vector<8x128xf32>
    %26 = tpu.matmul %24, %25, %cst_19 {dimension_numbers = #tpu.dot_dimension_numbers<[1], [0], [0], [1], [0, 0, 1, 1], [], []>} : vector<8x32xf32>, vector<32x128xf32>, vector<8x128xf32> -> vector<8x128xf32>
    %c0_20 = arith.constant 0 : index
    %c0_21 = arith.constant 0 : index
    %27 = vector.load %arg9[%c0_20, %c0_21] : memref<1x128xf32, #tpu.memory_space<vmem>>, vector<1x128xf32>
    %28 = vector.broadcast %27 : vector<1x128xf32> to vector<8x128xf32>
    %29 = arith.addf %26, %28 : vector<8x128xf32>
    %c0_22 = arith.constant 0 : index
    %c0_23 = arith.constant 0 : index
    %30 = vector.load %arg10[%c0_22, %c0_23] : memref<8x128xf32, #tpu.memory_space<vmem>>, vector<8x128xf32>
    tpu.vector_store %arg10[%c0_22, %c0_23], %29 {strides = array<i32>} : memref<8x128xf32, #tpu.memory_space<vmem>>, vector<8x128xf32>,
    return
  }
  func.func @transform_0(%arg0: i32) -> (i32, i32) {
    %c0_i32 = arith.constant 0 : i32
    %c0_i32_0 = arith.constant 0 : i32
    return %arg0, %c0_i32 : i32, i32
  }
  func.func @transform_1(%arg0: i32) -> (i32, i32) {
    %c0_i32 = arith.constant 0 : i32
    %c0_i32_0 = arith.constant 0 : i32
    return %arg0, %c0_i32 : i32, i32
  }
  func.func @transform_2(%arg0: i32) -> (i32, i32) {
    %c0_i32 = arith.constant 0 : i32
    %c0_i32_0 = arith.constant 0 : i32
    %c0_i32_1 = arith.constant 0 : i32
    return %c0_i32, %c0_i32_0 : i32, i32
  }
  func.func @transform_3(%arg0: i32) -> (i32, i32) {
    %c0_i32 = arith.constant 0 : i32
    %c0_i32_0 = arith.constant 0 : i32
    %c0_i32_1 = arith.constant 0 : i32
    return %c0_i32, %c0_i32_0 : i32, i32
  }
  func.func @transform_4(%arg0: i32) -> (i32, i32) {
    %c0_i32 = arith.constant 0 : i32
    %c0_i32_0 = arith.constant 0 : i32
    %c0_i32_1 = arith.constant 0 : i32
    return %c0_i32, %c0_i32_0 : i32, i32
  }
  func.func @transform_5(%arg0: i32) -> (i32, i32) {
    %c0_i32 = arith.constant 0 : i32
    %c0_i32_0 = arith.constant 0 : i32
    %c0_i32_1 = arith.constant 0 : i32
    return %c0_i32, %c0_i32_0 : i32, i32
  }
  func.func @transform_6(%arg0: i32) -> (i32, i32) {
    %c0_i32 = arith.constant 0 : i32
    %c0_i32_0 = arith.constant 0 : i32
    %c0_i32_1 = arith.constant 0 : i32
    return %c0_i32, %c0_i32_0 : i32, i32
  }
  func.func @transform_7(%arg0: i32) -> (i32, i32) {
    %c0_i32 = arith.constant 0 : i32
    %c0_i32_0 = arith.constant 0 : i32
    %c0_i32_1 = arith.constant 0 : i32
    return %c0_i32, %c0_i32_0 : i32, i32
  }
  func.func @transform_8(%arg0: i32) -> (i32, i32) {
    %c0_i32 = arith.constant 0 : i32
    %c0_i32_0 = arith.constant 0 : i32
    %c0_i32_1 = arith.constant 0 : i32
    return %c0_i32, %c0_i32_0 : i32, i32
  }
  func.func @transform_9(%arg0: i32) -> (i32, i32) {
    %c0_i32 = arith.constant 0 : i32
    %c0_i32_0 = arith.constant 0 : i32
    return %arg0, %c0_i32 : i32, i32
  }
}

</mosaic_0001>

<bundles_post_ra>
// kernel: tpu_custom_call.1
= control target key start
LH: loop header
LB: loop body
LE: loop exit
PB: predicated region body
PF: predicated region fallthrough
CT: control target
= control target key end

     0   :  { %14 = vsyncpa [#allocation3], 0  ;;  %s437_s0 = inlined_call_operand.vmem [shape: f32[8,2], index: 0, kind: input, shape index: {}]   ;;  %s438_s1 = inlined_call_operand.vmem [shape: f32[8,2], index: 1, kind: input, shape index: {}]   ;;  %s439_s2 = inlined_call_operand.vmem [shape: f32[2,32], index: 2, kind: input, shape index: {}]   ;;  %s440_s3 = inlined_call_operand.vmem [shape: f32[2,32], index: 3, kind: input, shape index: {}]   ;;  %s441_s4 = inlined_call_operand.vmem [shape: f32[1,32], index: 4, kind: input, shape index: {}]   ;;  %s442_s5 = inlined_call_operand.hbm [shape: f32[32,32], index: 5, kind: input, shape index: {}]   ;;  %s443_s6 = inlined_call_operand.vmem [shape: f32[1,32], index: 6, kind: input, shape index: {}]   ;;  %s444_s7 = inlined_call_operand.hbm [shape: f32[32,128], index: 7, kind: input, shape index: {}]   ;;  %s445_s8 = inlined_call_operand.vmem [shape: f32[1,128], index: 8, kind: input, shape index: {}]   ;;  %s446_s9 = inlined_call_operand.hbm [shape: f32[8,128], index: 9, kind: output, shape index: {}]  }
   0x1   :  { %15 = vsyncpa [#allocation6], 0 }
   0x2   :  { %16 = vsyncpa [#allocation4], 0  ;;  %s31_s11 = sshll.u32 %s442_s5, 4  ;;  %s350_s12 = smov [#allocation2]   ;;  %s32_s11 = int_to_ptr.hbm [resolvable:$true] %s31_s11 }
   0x3   :  { %s33_s13 = sshll.u32 %s350_s12, 4  ;;  %s46_s16 = sshll.u32 %s444_s7, 4  ;;  %s34_s13 = int_to_ptr.vmem [resolvable:$true] %s33_s13  ;;  %s47_s16 = int_to_ptr.hbm [resolvable:$true] %s46_s16 }
   0x4   :  { %s351_s17 = smov 128   ;;  %s352_s18 = smov 8  }
   0x5   :  { %39 = dma.hbm_to_vmem [thread:$0]  %s32_s11, 512, %s34_s13, [#allocation3], %s351_s17, %s351_s17, %s352_s18  }
   0x6   :  { %s353_s19 = smov [#allocation5]  }
   0x7   :  { %s48_s20 = sshll.u32 %s353_s19, 4  ;;  %s49_s20 = int_to_ptr.vmem [resolvable:$true] %s48_s20 }
   0x8   :  { %54 = dma.hbm_to_vmem [thread:$0]  %s47_s16, 512, %s49_s20, [#allocation6], %s351_s17, %s351_s17, %s352_s18  }
   0x9   :  { %344 = dma.done.wait [#allocation3], 512  }
   0xa   :  { %345 = vsyncadd [#allocation3], 4294966784 }
   0xb   :  { %346 = dma.done.wait [#allocation6], 512  }
   0xc   :  { %347 = vsyncadd [#allocation6], 4294966784  ;;  %vm73_vm0 = vcmask 1041408   ;;  %vm69_vm1 = vcmask 15360   ;;  %v68_v0 = vld [vmem:[%s440_s3] sm:$0x3] }
   0xd   :  { %v66_v1 = vld [vmem:[%s439_s2] sm:$0x3]  ;;  %248 = vmatpush.msk.msra.mxu0 %vm73_vm0, %v68_v0  ;;  %v150_v4 = vld [vmem:[#allocation2 + $0x18] sm:$0xff]  ;;  %v149_v5 = vld [vmem:[#allocation2 + $0x10] sm:$0xff]  ;;  %vm155_vm5 = vcmask 261120   ;;  %s354_s27 = smov [#allocation7]  }
   0xe   :  { %v67_v2 = vld [vmem:[%s438_s1] sm:$0xff]  ;;  %250 = vmatpush.msk.msra.mxu1 %vm73_vm0, %v66_v1  ;;  %171 = vmatpush.msra.mxu2 %v150_v4  ;;  %v148_v6 = vld [vmem:[#allocation2 + $0x8] sm:$0xff]  ;;  %v201_v26 = vld [vmem:[#allocation5 + $0x18] sm:$0xff]  ;;  %s235_s28 = sshll.u32 %s354_s27, 4  ;;  %s237_s10 = sshll.u32 %s446_s9, 4  ;;  %s236_s28 = int_to_ptr.vmem [resolvable:$true] %s235_s28  ;;  %s238_s10 = int_to_ptr.hbm [resolvable:$true] %s237_s10 }
   0xf   :  { %v65_v3 = vld [vmem:[%s437_s0] sm:$0xff]  ;;  %249 = vmatmul.msk.f32.vlgmr.msra.gmra.mxu0 %vm69_vm1, %v67_v2  ;;  %v200_v27 = vld [vmem:[#allocation5 + $0x10] sm:$0xff]  ;;  %221 = vmatpush.msra.mxu3 %v201_v26  ;;  %v199_v28 = vld [vmem:[#allocation5 + $0x8] sm:$0xff] }
  0x10   :  { %251 = vmatmul.msk.f32.vlgmr.msra.gmra.mxu1 %vm69_vm1, %v65_v3  ;;  %172 = vmatpush.msra.mxu2 %v149_v5  ;;  %v147_v7 = vld [vmem:[#allocation2] sm:$0xff] }
  0x11   :  { %v261_v8 = vld [vmem:[%s441_s4] ss:$0 sm:$0xff]  ;;  %222 = vmatpush.msra.mxu3 %v200_v27 }
  0x12   :  { %173 = vmatpush.msra.mxu2 %v148_v6  ;;  %v198_v29 = vld [vmem:[#allocation5] sm:$0xff] }
  0x13   :  { %223 = vmatpush.msra.mxu3 %v199_v28  ;;  %v262_v30 = vld [vmem:[%s443_s6] ss:$0 sm:$0xff] }
  0x14   :  { %174 = vmatpush.msra.mxu2 %v147_v7  ;;  %v263_v46 = vld [vmem:[%s445_s8] ss:$0 sm:$0xff] }
  0x15   :  { %224 = vmatpush.msra.mxu3 %v198_v29 }
  0x8c   :  { %v94_v9 = vpop.f32.mrf.mxu0 }
  0x8d   :  { %v120_v10 = vpop.f32.mrf.mxu1 }
  0x8e   :  { %v121_v11 = vadd.f32 %v120_v10, %v94_v9 }
  0x90   :  { %v127_v12 = vadd.f32 %v261_v8, %v121_v11 }
  0x92   :  { %v252_v13 = vmul.f32 -1.442695, %v127_v12 }
  0x94   :  { %264 = vpow2.f32 %v252_v13 }
  0x9a   :  { %v265_v14 = vpop.eup %264 }
  0x9b   :  { %v131_v15 = vadd.f32 1.0, %v265_v14 }
  0x9d   :  { %266 = vrcp.f32 %v131_v15  ;;  %v143_v19 = vand.u32 2147483648, %v131_v15  ;;  %v141_v21 = vand.u32 2147483647, %v131_v15  ;;  %vm137_vm3 = vweird.f32 %v131_v15 }
  0x9f   :  { %v144_v23 = vor.u32 1.1754944e-38, %v143_v19  ;;  %vm142_vm6 = vcmp.eq.f32.partialorder %v141_v21, 8.507059e+37 }
  0xa3   :  { %v267_v16 = vpop.eup %266 }
  0xa4   :  { %v133_v17 = vmul.f32 %v267_v16, %v131_v15  ;;  %vm138_vm2 = vweird.f32 %v267_v16 }
  0xa5   :  { %vm139_vm4 = vmor %vm137_vm3, %vm138_vm2 }
  0xa6   :  { %v134_v18 = vsub.f32 1.0, %v133_v17 }
  0xa8   :  { %v135_v20 = vmul.f32 %v267_v16, %v134_v18 }
  0xaa   :  { %v136_v22 = vadd.f32 %v267_v16, %v135_v20 }
  0xac   :  { %v140_v24 = vsel %vm139_vm4, %v267_v16, %v136_v22 }
  0xad   :  { %v145_v25 = vsel %vm142_vm6, %v144_v23, %v140_v24 }
  0xae   :  { %253 = vmatmul.msk.f32.vlgmr.msra.gmra.mxu2 %vm155_vm5, %v145_v25 }
 0x131   :  { %v176_v31 = vpop.f32.mrf.mxu2 }
 0x132   :  { %v177_v32 = vadd.f32 %v262_v30, %v176_v31 }
 0x134   :  { %v254_v33 = vmul.f32 -1.442695, %v177_v32 }
 0x136   :  { %268 = vpow2.f32 %v254_v33 }
 0x13c   :  { %v269_v34 = vpop.eup %268 }
 0x13d   :  { %v182_v35 = vadd.f32 1.0, %v269_v34 }
 0x13f   :  { %270 = vrcp.f32 %v182_v35  ;;  %v194_v39 = vand.u32 2147483648, %v182_v35  ;;  %v192_v41 = vand.u32 2147483647, %v182_v35  ;;  %vm188_vm8 = vweird.f32 %v182_v35 }
 0x141   :  { %v195_v43 = vor.u32 1.1754944e-38, %v194_v39  ;;  %vm193_vm10 = vcmp.eq.f32.partialorder %v192_v41, 8.507059e+37 }
 0x145   :  { %v271_v36 = vpop.eup %270 }
 0x146   :  { %v184_v37 = vmul.f32 %v271_v36, %v182_v35  ;;  %vm189_vm7 = vweird.f32 %v271_v36 }
 0x147   :  { %vm190_vm9 = vmor %vm188_vm8, %vm189_vm7 }
 0x148   :  { %v185_v38 = vsub.f32 1.0, %v184_v37 }
 0x14a   :  { %v186_v40 = vmul.f32 %v271_v36, %v185_v38 }
 0x14c   :  { %v187_v42 = vadd.f32 %v271_v36, %v186_v40 }
 0x14e   :  { %v191_v44 = vsel %vm190_vm9, %v271_v36, %v187_v42 }
 0x14f   :  { %v196_v45 = vsel %vm193_vm10, %v195_v43, %v191_v44 }
 0x150   :  { %255 = vmatmul.msk.f32.vlgmr.msra.gmra.mxu3 %vm155_vm5, %v196_v45 }
 0x1d3   :  { %v226_v47 = vpop.f32.mrf.mxu3 }
 0x1d4   :  { %v227_v48 = vadd.f32 %v263_v46, %v226_v47 }
 0x1d6   :  { %229 = vst [vmem:[#allocation7] sm:$0xff] %v227_v48 }
 0x1d7   :  { %240 = dma.vmem_to_hbm [thread:$0]  %s236_s28, 128, %s238_s10, [#allocation4]  }
 0x1d8   :  { %348 = dma.done.wait [#allocation4], 128  }
 0x1d9   :  { %349 = vsyncadd [#allocation4], 4294967168 }
 0x1da   :  { %245 = vsyncpa [#allocation3], 1 }
 0x1db   :  { %246 = vsyncpa [#allocation6], 1 }
 0x1dc   :  { %247 = vsyncpa [#allocation4], 1 }

</bundles_post_ra>
